<compile_context>
chip_gen: v7x
topology: tpu7x:2x2x1
jax: 0.10.0
libtpu: 0.0.40
codegen_flags: <defaults>
</compile_context>

<pallas_src>
import jax
import jax.numpy as jnp
import numpy as np
from jax.experimental import pallas as pl
from jax.experimental.pallas import tpu as pltpu


def _round_up(x, m):
    return ((x + m - 1) // m) * m


def _cdiv(a, b):
    return -(-a // b)


def _vmem_budget_bytes():
    # Physical VMEM: 128 MiB (v5e/v6e), 64 MiB per TC (v7x). Keep the
    # double-buffered working set well under the physical capacity.
    try:
        cap = int(pltpu.get_tpu_info().vmem_capacity_bytes)
    except Exception:
        cap = 64 << 20  # conservative (v7x-sized) fallback
    return min(cap // 2, 48 << 20)


def prepare_weight(weight):
    """One-time relayout: nn.Linear weight [d_out, d_in] -> [d_in, d_out].

    Call this once per layer (outside the hot path) and pass the result to
    linear_pallas(..., weight_transposed=True).
    """
    return jnp.asarray(weight).T


# ----------------------------- Pallas kernel ------------------------------- #
def _linear_kernel(x_ref, w_ref, b_ref, o_ref, acc_ref):
    """One (tm, tn) output tile of out = X @ W + b, accumulated over K tiles."""
    k = pl.program_id(2)

    @pl.when(k == 0)
    def _():
        acc_ref[...] = jnp.zeros_like(acc_ref)

    acc_ref[...] += jnp.dot(x_ref[...], w_ref[...],
                            preferred_element_type=jnp.float32)

    @pl.when(k == pl.num_programs(2) - 1)
    def _():
        o_ref[...] = (acc_ref[...] + b_ref[...]).astype(o_ref.dtype)


# ------------------------------ wrapper ------------------------------------ #
def linear_pallas(x, weight, bias=None, *, weight_transposed=False,
                  compute_dtype=None, tm_cap=512, tn_cap=512, tk_cap=1024):
    """nn.Linear forward: y = x @ W.T + b.

    x:      [..., dim_in]
    weight: [dim_out, dim_in] (PyTorch layout) or, if weight_transposed=True,
            [dim_in, dim_out] (pre-laid-out via prepare_weight()).
    bias:   [dim_out] or None
    compute_dtype: e.g. jnp.bfloat16 for MXU-native throughput (f32 accumulate).
    """
    orig_dtype = x.dtype
    lead = x.shape[:-1]
    d_in = x.shape[-1]

    if weight_transposed:
        d_out = weight.shape[1]
        w = weight
    else:
        d_out = weight.shape[0]
        # Hot-path transpose; prefer prepare_weight() + weight_transposed=True.
        w = weight.T

    x2 = x.reshape(-1, d_in)
    m = x2.shape[0]
    if m == 0:  # degenerate empty batch
        return jnp.zeros(lead + (d_out,), orig_dtype)

    cdt = compute_dtype if compute_dtype is not None else orig_dtype
    in_bytes = jnp.dtype(cdt).itemsize
    out_bytes = jnp.dtype(orig_dtype).itemsize
    # Sublane granularity: 8 (f32), 16 (bf16), 32 (int8/fp8).
    sub = max(8, 32 // max(in_bytes, 1))

    budget = _vmem_budget_bytes()

    # ---- single-tile fast path: full-extent blocks, no padding, no slicing ----
    single_tile = (m <= tm_cap and d_in <= tk_cap and d_out <= tn_cap)
    if single_tile:
        footprint = (2 * (m * d_in + d_in * d_out + d_out) * in_bytes
                     + 2 * m * d_out * out_bytes + m * d_out * 4)
        single_tile = footprint <= budget
    if single_tile:
        tm, tk, tn = m, d_in, d_out
        m_pad, k_pad, n_pad = m, d_in, d_out
    else:
        tm = tm_cap if m >= tm_cap else _round_up(m, sub)
        m_pad = _round_up(m, tm)
        k128 = _round_up(d_in, 128)
        n128 = _round_up(d_out, 128)
        tk = tk_cap if k128 > tk_cap else k128
        # Drop the N grid axis when the whole W column panel fits one tile:
        # W is then streamed once per M block instead of once per (i, j).
        tn = tn_cap if n128 > tn_cap else n128
        # v7x has 2 TensorCores: when M has only one block, split N so a
        # parallel axis has >= 2 blocks.
        if m_pad // tm == 1 and n128 // tn < 2 and n128 >= 256:
            tn = _round_up(_cdiv(n128, 2), 128)
        k_pad = _round_up(d_in, tk)
        n_pad = _round_up(d_out, tn)

    if compute_dtype is not None:
        x2 = x2.astype(compute_dtype)
        w = w.astype(compute_dtype)

    # Pad only when actually ragged (zero padding is inert for the matmul).
    if m_pad != m or k_pad != d_in:
        x2 = jnp.pad(x2, ((0, m_pad - m), (0, k_pad - d_in)))
    if k_pad != d_in or n_pad != d_out:
        w = jnp.pad(w, ((0, k_pad - d_in), (0, n_pad - d_out)))
    if bias is None:
        b2 = jnp.zeros((1, n_pad), jnp.float32)
    else:
        b2 = bias.astype(jnp.float32).reshape(1, d_out)
        if n_pad != d_out:
            b2 = jnp.pad(b2, ((0, 0), (0, n_pad - d_out)))

    grid = (m_pad // tm, n_pad // tn, k_pad // tk)

    # VMEM limit from actual tile math (double-buffered inputs/outputs + acc).
    tile_bytes = (2 * (tm * tk + tk * tn + tn) * in_bytes
                  + 2 * tm * tn * out_bytes + tm * tn * 4)
    vmem_limit = int(min(max(2 * tile_bytes, 16 << 20), budget))

    cost = pl.CostEstimate(
        flops=2 * m_pad * k_pad * n_pad,
        transcendentals=0,
        bytes_accessed=((m_pad * k_pad + k_pad * n_pad + n_pad) * in_bytes
                        + m_pad * n_pad * out_bytes),
    )

    grid_spec = pltpu.PrefetchScalarGridSpec(
        num_scalar_prefetch=0,
        grid=grid,
        in_specs=[
            pl.BlockSpec((tm, tk), lambda i, j, k: (i, k)),   # X tile
            pl.BlockSpec((tk, tn), lambda i, j, k: (k, j)),   # W tile
            pl.BlockSpec((1, tn), lambda i, j, k: (0, j)),    # bias tile
        ],
        out_specs=pl.BlockSpec((tm, tn), lambda i, j, k: (i, j)),
        scratch_shapes=[pltpu.VMEM((tm, tn), jnp.float32)],
    )

    out = pl.pallas_call(
        _linear_kernel,
        out_shape=jax.ShapeDtypeStruct((m_pad, n_pad), orig_dtype),
        grid_spec=grid_spec,
        compiler_params=pltpu.CompilerParams(
            dimension_semantics=("parallel", "parallel", "arbitrary"),
            vmem_limit_bytes=vmem_limit,
        ),
        cost_estimate=cost,
    )(x2, w, b2)

    if m_pad != m or n_pad != d_out:
        out = out[:m, :d_out]
    return out.reshape(*lead, d_out)


# ------------------------------- main --------------------------------------- #
if __name__ == "__main__":
    BATCH, SEQ = 2, 8
    DIM_IN, DIM_OUT = 32, 16

    key = jax.random.PRNGKey(0)
    kx, kw, kb = jax.random.split(key, 3)

    # Input features [batch, seq, dim_in].
    x = jax.random.normal(kx, (BATCH, SEQ, DIM_IN), dtype=jnp.float32)

    # nn.Linear default init: U(-1/sqrt(fan_in), 1/sqrt(fan_in)) for W and b.
    bound = float(1.0 / np.sqrt(DIM_IN))
    weight = jax.random.uniform(kw, (DIM_OUT, DIM_IN),
                                minval=-bound, maxval=bound, dtype=jnp.float32)
    bias = jax.random.uniform(kb, (DIM_OUT,),
                              minval=-bound, maxval=bound, dtype=jnp.float32)

    # Hoist the weight relayout out of the hot path (static across calls).
    w_t = prepare_weight(weight)

    # Exact f32 path (matches nn.Linear numerics).
    out = jax.block_until_ready(
        linear_pallas(x, w_t, bias, weight_transposed=True))

    ref = x @ weight.T + bias
    np.testing.assert_allclose(np.asarray(out), np.asarray(ref),
                               rtol=1e-5, atol=1e-5)
    assert out.shape == (BATCH, SEQ, DIM_OUT)

    # bf16 MXU path (f32 accumulation) — looser numerics, higher throughput.
    out_bf16 = jax.block_until_ready(
        linear_pallas(x, w_t, bias, weight_transposed=True,
                      compute_dtype=jnp.bfloat16))
    np.testing.assert_allclose(np.asarray(out_bf16), np.asarray(ref),
                               rtol=2e-2, atol=2e-2)

    print("KERNEL_OK")
</pallas_src>

<mosaic_0001>
module attributes {stable_mosaic.version = 11 : i64} {
  func.func @_linear_kernel(%arg0: i32, %arg1: i32, %arg2: i32, %arg3: memref<16x32xf32, #tpu.memory_space<vmem>>, %arg4: memref<32x16xf32, #tpu.memory_space<vmem>>, %arg5: memref<1x16xf32, #tpu.memory_space<vmem>>, %arg6: memref<16x16xf32, #tpu.memory_space<vmem>>, %arg7: memref<16x16xf32, #tpu.memory_space<vmem>>) attributes {dimension_semantics = [#tpu.dimension_semantics<parallel>, #tpu.dimension_semantics<parallel>, #tpu.dimension_semantics<arbitrary>], iteration_bounds = array<i64: 1, 1, 1>, scalar_prefetch = 0 : i64, scratch_operands = 1 : i64, tpu.core_type = #tpu.core_type<tc>, window_params = [{transform_indices = @transform_0, window_bounds = array<i64: 16, 32>}, {transform_indices = @transform_1, window_bounds = array<i64: 32, 16>}, {transform_indices = @transform_2, window_bounds = array<i64: 1, 16>}, {transform_indices = @transform_3, window_bounds = array<i64: 16, 16>}]} {
    %c0_i32 = arith.constant 0 : i32
    %0 = arith.cmpi eq, %arg2, %c0_i32 : i32
    %1 = arith.extui %0 : i1 to i32
    %c0_i32_0 = arith.constant 0 : i32
    %2 = arith.cmpi ne, %1, %c0_i32_0 : i32
    scf.if %2 {
      %cst_10 = arith.constant 0.000000e+00 : f32
      %12 = vector.broadcast %cst_10 : f32 to vector<16x16xf32>
      %c0_11 = arith.constant 0 : index
      %c0_12 = arith.constant 0 : index
      %13 = vector.load %arg7[%c0_11, %c0_12] : memref<16x16xf32, #tpu.memory_space<vmem>>, vector<16x16xf32>
      tpu.vector_store %arg7[%c0_11, %c0_12], %12 {strides = array<i32>} : memref<16x16xf32, #tpu.memory_space<vmem>>, vector<16x16xf32>,
    } else {
    }
    %c0 = arith.constant 0 : index
    %c0_1 = arith.constant 0 : index
    %3 = vector.load %arg7[%c0, %c0_1] : memref<16x16xf32, #tpu.memory_space<vmem>>, vector<16x16xf32>
    %c0_2 = arith.constant 0 : index
    %c0_3 = arith.constant 0 : index
    %4 = vector.load %arg3[%c0_2, %c0_3] : memref<16x32xf32, #tpu.memory_space<vmem>>, vector<16x32xf32>
    %c0_4 = arith.constant 0 : index
    %c0_5 = arith.constant 0 : index
    %5 = vector.load %arg4[%c0_4, %c0_5] : memref<32x16xf32, #tpu.memory_space<vmem>>, vector<32x16xf32>
    %cst = arith.constant dense<0.000000e+00> : vector<16x16xf32>
    %6 = tpu.matmul %4, %5, %cst {dimension_numbers = #tpu.dot_dimension_numbers<[1], [0], [0], [1], [0, 0, 1, 1], [], []>} : vector<16x32xf32>, vector<32x16xf32>, vector<16x16xf32> -> vector<16x16xf32>
    %7 = arith.addf %3, %6 : vector<16x16xf32>
    %c0_6 = arith.constant 0 : index
    %c0_7 = arith.constant 0 : index
    %8 = vector.load %arg7[%c0_6, %c0_7] : memref<16x16xf32, #tpu.memory_space<vmem>>, vector<16x16xf32>
    tpu.vector_store %arg7[%c0_6, %c0_7], %7 {strides = array<i32>} : memref<16x16xf32, #tpu.memory_space<vmem>>, vector<16x16xf32>,
    %c0_i32_8 = arith.constant 0 : i32
    %9 = arith.cmpi eq, %arg2, %c0_i32_8 : i32
    %10 = arith.extui %9 : i1 to i32
    %c0_i32_9 = arith.constant 0 : i32
    %11 = arith.cmpi ne, %10, %c0_i32_9 : i32
    scf.if %11 {
      %c0_10 = arith.constant 0 : index
      %c0_11 = arith.constant 0 : index
      %12 = vector.load %arg7[%c0_10, %c0_11] : memref<16x16xf32, #tpu.memory_space<vmem>>, vector<16x16xf32>
      %c0_12 = arith.constant 0 : index
      %c0_13 = arith.constant 0 : index
      %13 = vector.load %arg5[%c0_12, %c0_13] : memref<1x16xf32, #tpu.memory_space<vmem>>, vector<1x16xf32>
      %14 = vector.broadcast %13 : vector<1x16xf32> to vector<16x16xf32>
      %15 = arith.addf %12, %14 : vector<16x16xf32>
      %c0_14 = arith.constant 0 : index
      %c0_15 = arith.constant 0 : index
      %16 = vector.load %arg6[%c0_14, %c0_15] : memref<16x16xf32, #tpu.memory_space<vmem>>, vector<16x16xf32>
      tpu.vector_store %arg6[%c0_14, %c0_15], %15 {strides = array<i32>} : memref<16x16xf32, #tpu.memory_space<vmem>>, vector<16x16xf32>,
    } else {
    }
    return
  }
  func.func @transform_0(%arg0: i32, %arg1: i32, %arg2: i32) -> (i32, i32) {
    %c0_i32 = arith.constant 0 : i32
    return %arg0, %arg2 : i32, i32
  }
  func.func @transform_1(%arg0: i32, %arg1: i32, %arg2: i32) -> (i32, i32) {
    %c0_i32 = arith.constant 0 : i32
    return %arg2, %arg1 : i32, i32
  }
  func.func @transform_2(%arg0: i32, %arg1: i32, %arg2: i32) -> (i32, i32) {
    %c0_i32 = arith.constant 0 : i32
    %c0_i32_0 = arith.constant 0 : i32
    return %c0_i32, %arg1 : i32, i32
  }
  func.func @transform_3(%arg0: i32, %arg1: i32, %arg2: i32) -> (i32, i32) {
    %c0_i32 = arith.constant 0 : i32
    return %arg0, %arg1 : i32, i32
  }
}

</mosaic_0001>

<bundles_post_ra>
// kernel: tpu_custom_call.1
= control target key start
LH: loop header
LB: loop body
LE: loop exit
PB: predicated region body
PF: predicated region fallthrough
CT: control target
= control target key end

     0   :  { %vm30_vm0 = vcmask 261120   ;;  %vm19_vm1 = vcmask 130048   ;;  %v205_v6 = vmov 0.0   ;;  %s270_s0 = inlined_call_operand.vmem [shape: f32[16,32], index: 0, kind: input, shape index: {}]   ;;  %s271_s1 = inlined_call_operand.vmem [shape: f32[32,16], index: 1, kind: input, shape index: {}]   ;;  %s272_s2 = inlined_call_operand.vmem [shape: f32[1,16], index: 2, kind: input, shape index: {}]   ;;  %s273_s3 = inlined_call_operand.hbm [shape: f32[16,16], index: 3, kind: output, shape index: {}]  }
   0x1   :  { %v26_v0 = vld [vmem:[%s271_s1] sm:$0xff]  ;;  %v27_v1 = vld [vmem:[%s271_s1 + $0x8] sm:$0xff]  ;;  %v28_v2 = vld [vmem:[%s271_s1 + $0x10] sm:$0xff]  ;;  %21 = vst.msk [vmem:[#allocation2 + $0x8] sm:$0xff] %vm19_vm1, %v205_v6 }
   0x2   :  { %v169_v3 = vpack.c.bf16 %v27_v1, %v26_v0  ;;  %v29_v4 = vld [vmem:[%s271_s1 + $0x18] sm:$0xff]  ;;  %v24_v5 = vld [vmem:[%s270_s0] sm:$0xff]  ;;  %20 = vst.msk [vmem:[#allocation2] sm:$0xff] %vm19_vm1, %v205_v6 }
   0x3   :  { %v173_v7 = vpack.c.bf16 %v29_v4, %v28_v2  ;;  %166 = vmatprep.mubr.msk.f32.mxu0 %vm30_vm0, %v24_v5 }
   0x4   :  { %8 = vsyncpa [#allocation4], 0  ;;  %170 = vmatprep.subr.bf16.mxu0 %v169_v3  ;;  %v25_v8 = vld [vmem:[%s270_s0 + $0x8] sm:$0xff]  ;;  %v151_v15 = vld [vmem:[%s272_s2] ss:$0 sm:$0xff]  ;;  %s206_s25 = smov [#allocation3]  }
   0x5   :  { %172 = vmatpush3.bf16.msra.mxu0 %v169_v3  ;;  %s138_s26 = sshll.u32 %s206_s25, 4  ;;  %s139_s26 = int_to_ptr.vmem [resolvable:$true] %s138_s26 }
   0x6   :  { %174 = vmatprep.subr.bf16.mxu0 %v173_v7  ;;  %s181_s0 = scalar_lea.vmem %s139_s26, 256  ;;  %p186_p1 = scmp.lt.s32.totalorder %s139_s26, %s139_s26 }
   0x7   :  { %p182_p0 = scmp.ne.s32.totalorder %s139_s26, %s181_s0  ;;  %p187_p2 = scmp.lt.s32.totalorder %s181_s0, %s181_s0 }
   0x8   :  { %v23_v9 = vld [vmem:[#allocation2 + $0x8] sm:$0xff] }
   0x9   :  { %176 = vmatpush3.bf16.msra.mxu0 %v173_v7  ;;  %v22_v10 = vld [vmem:[#allocation2] sm:$0xff]  ;;  %p188_p3 = por %p187_p2, %p186_p1 }
   0xb   :  { %p189_p4 = pnand %p188_p3, %p182_p0 }
   0xc   :  { %167 = vmatmul.mubr.msk.f32.vlgmr.msra.gmra.mrb[0].mxu0 %vm30_vm0, %v25_v8 }
  0xdf   :  { %v168_v11 = vpop.f32.mrb[0].mxu0 }
  0xe0   :  { %v113_v12 = vadd.f32 %v168_v11, %v23_v9  ;;  %v103_v13 = vpop.f32.mrb[1].mxu0 }
  0xe1   :  { %v112_v14 = vadd.f32 %v103_v13, %v22_v10 }
  0xe2   :  { %116 = vst.msk [vmem:[#allocation2 + $0x8] sm:$0xff] %vm19_vm1, %v113_v12 }
  0xe3   :  { %115 = vst.msk [vmem:[#allocation2] sm:$0xff] %vm19_vm1, %v112_v14 }
  0xe9   :  { %v121_v16 = vld [vmem:[#allocation2 + $0x8] sm:$0xff] }
  0xea   :  { %v120_v17 = vld [vmem:[#allocation2] sm:$0xff]  ;;  %v130_v18 = vadd.f32 %v151_v15, %v121_v16 }
  0xeb   :  { %v129_v19 = vadd.f32 %v151_v15, %v120_v17 }
  0xec   :  { %132 = vst.msk [vmem:[#allocation3 + $0x8] sm:$0xff] %vm19_vm1, %v130_v18 }
  0xed   :  { %131 = vst.msk [vmem:[#allocation3] sm:$0xff] %vm19_vm1, %v129_v19 }
  0xee   :  { %192 = shalt.err (!%p189_p4)
}
  0xef   :  { %s193_s28 = scalar_lea.hbm %s273_s3, 256 }
  0xf0   :  { %p194_p5 = scmp.ne.s32.totalorder %s273_s3, %s193_s28  ;;  %p197_p6 = scmp.lt.u32.totalorder %s193_s28, %s273_s3 }
  0xf2   :  { %p199_p7 = pnand %p197_p6, %p194_p5 }
  0xf4   :  { %202 = shalt.err (!%p199_p7)
}
  0xf5   :  { %s207_s6 = smov 128   ;;  %s208_s7 = smov 8  }
  0xf6   :  { %144 = dma.vmem_to_hbm [thread:$0]  %s139_s26, 256, %s273_s3, [#allocation4], %s207_s6, %s207_s6, %s208_s7  }
  0xf7   :  { %203 = dma.done.wait [#allocation4], 256  }
  0xf8   :  { %204 = vsyncadd [#allocation4], 4294967040 }
  0xf9   :  { %148 = vsyncpa [#allocation4], 1 }

</bundles_post_ra>
